<compile_context>
chip_gen: v7x
topology: tpu7x:2x2x1
jax: 0.10.0
libtpu: 0.0.40
codegen_flags: <defaults>
</compile_context>

<pallas_src>
import functools

import jax
import jax.numpy as jnp
from jax.experimental import pallas as pl
from jax.experimental.pallas import tpu as pltpu


def _glu_kernel(x_ref, w4_ref, b4_ref, w5_ref, b5_ref, out_ref, *, activation):
    x = x_ref[...]                                  # (tm, K)

    # Gate branch: sigmoid(x @ W4 + b4), f32 accumulation on the MXU.
    gate = jnp.dot(x, w4_ref[...], preferred_element_type=jnp.float32)
    gate = jax.nn.sigmoid(gate + b4_ref[...])

    # Value branch: x @ W5 + b5 (+ optional activation).
    val = jnp.dot(x, w5_ref[...], preferred_element_type=jnp.float32)
    val = val + b5_ref[...]
    if activation is None:
        pass
    elif activation == "ELU":
        val = jnp.where(val > 0, val, jnp.expm1(val))
    elif activation == "Tanh":
        val = jnp.tanh(val)
    elif activation == "ReLU":
        val = jnp.maximum(val, 0.0)
    else:
        raise NotImplementedError(f"activation {activation!r} not supported")

    out_ref[...] = (gate * val).astype(out_ref.dtype)


def gated_linear_unit(x, w4, b4, w5, b5, *, activation=None, dropout_rate=0.0,
                      block_rows=256):
    """Pallas equivalent of GatedLinearUnit.forward.

    x : (..., input_size)
    w4, w5 : (input_size, hidden)   -- NOTE: transposed vs. torch Linear.weight
    b4, b5 : (hidden,)
    Returns (..., hidden) in x.dtype.
    """
    # TODO(synk): training-mode nn.Dropout (p>0) would need pltpu.prng_seed /
    # pltpu.prng_random_bits; eval-mode / p=0 dropout is the identity here.
    del dropout_rate

    orig_lead = x.shape[:-1]
    in_size = x.shape[-1]
    hidden = w4.shape[-1]

    x2 = x.reshape(-1, in_size)
    n = x2.shape[0]

    # Rows per grid step: multiple of 8 (sublane), capped to keep VMEM small
    # even for long sequences (weights stay resident, only x/out stream).
    tm = min(block_rows, n)
    tm = max(8, ((tm + 7) // 8) * 8)
    pn = ((n + tm - 1) // tm) * tm
    if pn != n:
        x2 = jnp.pad(x2, ((0, pn - n), (0, 0)))

    b4_2 = b4.reshape(1, hidden).astype(jnp.float32)
    b5_2 = b5.reshape(1, hidden).astype(jnp.float32)

    kernel = functools.partial(_glu_kernel, activation=activation)

    out = pl.pallas_call(
        kernel,
        out_shape=jax.ShapeDtypeStruct((pn, hidden), x.dtype),
        grid_spec=pltpu.PrefetchScalarGridSpec(
            num_scalar_prefetch=0,
            grid=(pn // tm,),
            in_specs=[
                pl.BlockSpec((tm, in_size), lambda i: (i, 0)),       # x tile
                pl.BlockSpec((in_size, hidden), lambda i: (0, 0)),   # W4 (resident)
                pl.BlockSpec((1, hidden), lambda i: (0, 0)),         # b4
                pl.BlockSpec((in_size, hidden), lambda i: (0, 0)),   # W5 (resident)
                pl.BlockSpec((1, hidden), lambda i: (0, 0)),         # b5
            ],
            out_specs=pl.BlockSpec((tm, hidden), lambda i: (i, 0)),
        ),
        compiler_params=pltpu.CompilerParams(
            dimension_semantics=("parallel",)),
    )(x2, w4, b4_2, w5, b5_2)

    out = out[:n]
    return out.reshape(*orig_lead, hidden)


def _reference(x, w4, b4, w5, b5, activation=None):
    gate = jax.nn.sigmoid(x @ w4 + b4)
    val = x @ w5 + b5
    if activation == "ELU":
        val = jnp.where(val > 0, val, jnp.expm1(val))
    elif activation == "Tanh":
        val = jnp.tanh(val)
    elif activation == "ReLU":
        val = jnp.maximum(val, 0.0)
    return gate * val


def _xavier_uniform(key, fan_in, fan_out, dtype=jnp.float32):
    limit = jnp.sqrt(6.0 / (fan_in + fan_out))
    return jax.random.uniform(key, (fan_in, fan_out), dtype=dtype,
                              minval=-limit, maxval=limit)


if __name__ == "__main__":
    key = jax.random.PRNGKey(0)
    kx, k4, k5, kb4, kb5 = jax.random.split(key, 5)

    B, T, IN, HID = 2, 8, 32, 32
    x = jax.random.normal(kx, (B, T, IN), dtype=jnp.float32)
    # Weights stored as (input_size, hidden) == torch Linear.weight.T
    w4 = _xavier_uniform(k4, IN, HID)
    w5 = _xavier_uniform(k5, IN, HID)
    # Module inits biases to zero; use small nonzero biases here to also
    # exercise the bias-add path.
    b4 = 0.1 * jax.random.normal(kb4, (HID,), dtype=jnp.float32)
    b5 = 0.1 * jax.random.normal(kb5, (HID,), dtype=jnp.float32)

    # activation=None branch (module default)
    out = gated_linear_unit(x, w4, b4, w5, b5, activation=None,
                            dropout_rate=0.0)
    jax.block_until_ready(out)
    ref = _reference(x, w4, b4, w5, b5, activation=None)
    assert out.shape == (B, T, HID)
    assert jnp.allclose(out, ref, atol=1e-5, rtol=1e-5), "GLU (no act) mismatch"

    # activation='ELU' branch (as used in some TFT configs)
    out_elu = gated_linear_unit(x, w4, b4, w5, b5, activation="ELU",
                                dropout_rate=0.0)
    jax.block_until_ready(out_elu)
    ref_elu = _reference(x, w4, b4, w5, b5, activation="ELU")
    assert jnp.allclose(out_elu, ref_elu, atol=1e-5, rtol=1e-5), "GLU (ELU) mismatch"

    print("KERNEL_OK")
</pallas_src>

<mosaic_0001>
module attributes {stable_mosaic.version = 11 : i64} {
  func.func @_glu_kernel(%arg0: i32, %arg1: memref<16x32xf32, #tpu.memory_space<vmem>>, %arg2: memref<32x32xf32, #tpu.memory_space<vmem>>, %arg3: memref<1x32xf32, #tpu.memory_space<vmem>>, %arg4: memref<32x32xf32, #tpu.memory_space<vmem>>, %arg5: memref<1x32xf32, #tpu.memory_space<vmem>>, %arg6: memref<16x32xf32, #tpu.memory_space<vmem>>) attributes {dimension_semantics = [#tpu.dimension_semantics<parallel>], iteration_bounds = array<i64: 1>, scalar_prefetch = 0 : i64, scratch_operands = 0 : i64, tpu.core_type = #tpu.core_type<tc>, window_params = [{transform_indices = @transform_0, window_bounds = array<i64: 16, 32>}, {pipeline_mode = #tpu.pipeline_mode<synchronous>, transform_indices = @transform_1, window_bounds = array<i64: 32, 32>}, {pipeline_mode = #tpu.pipeline_mode<synchronous>, transform_indices = @transform_2, window_bounds = array<i64: 1, 32>}, {pipeline_mode = #tpu.pipeline_mode<synchronous>, transform_indices = @transform_3, window_bounds = array<i64: 32, 32>}, {pipeline_mode = #tpu.pipeline_mode<synchronous>, transform_indices = @transform_4, window_bounds = array<i64: 1, 32>}, {transform_indices = @transform_5, window_bounds = array<i64: 16, 32>}]} {
    %c0 = arith.constant 0 : index
    %c0_0 = arith.constant 0 : index
    %0 = vector.load %arg1[%c0, %c0_0] : memref<16x32xf32, #tpu.memory_space<vmem>>, vector<16x32xf32>
    %c0_1 = arith.constant 0 : index
    %c0_2 = arith.constant 0 : index
    %1 = vector.load %arg2[%c0_1, %c0_2] : memref<32x32xf32, #tpu.memory_space<vmem>>, vector<32x32xf32>
    %cst = arith.constant dense<0.000000e+00> : vector<16x32xf32>
    %2 = tpu.matmul %0, %1, %cst {dimension_numbers = #tpu.dot_dimension_numbers<[1], [0], [0], [1], [0, 0, 1, 1], [], []>} : vector<16x32xf32>, vector<32x32xf32>, vector<16x32xf32> -> vector<16x32xf32>
    %c0_3 = arith.constant 0 : index
    %c0_4 = arith.constant 0 : index
    %3 = vector.load %arg3[%c0_3, %c0_4] : memref<1x32xf32, #tpu.memory_space<vmem>>, vector<1x32xf32>
    %4 = vector.broadcast %3 : vector<1x32xf32> to vector<16x32xf32>
    %5 = arith.addf %2, %4 : vector<16x32xf32>
    %6 = arith.negf %5 : vector<16x32xf32>
    %7 = math.exp %6 : vector<16x32xf32>
    %cst_5 = arith.constant 1.000000e+00 : f32
    %8 = vector.broadcast %cst_5 : f32 to vector<16x32xf32>
    %9 = arith.addf %8, %7 : vector<16x32xf32>
    %10 = arith.divf %8, %9 : vector<16x32xf32>
    %c0_6 = arith.constant 0 : index
    %c0_7 = arith.constant 0 : index
    %11 = vector.load %arg4[%c0_6, %c0_7] : memref<32x32xf32, #tpu.memory_space<vmem>>, vector<32x32xf32>
    %cst_8 = arith.constant dense<0.000000e+00> : vector<16x32xf32>
    %12 = tpu.matmul %0, %11, %cst_8 {dimension_numbers = #tpu.dot_dimension_numbers<[1], [0], [0], [1], [0, 0, 1, 1], [], []>} : vector<16x32xf32>, vector<32x32xf32>, vector<16x32xf32> -> vector<16x32xf32>
    %c0_9 = arith.constant 0 : index
    %c0_10 = arith.constant 0 : index
    %13 = vector.load %arg5[%c0_9, %c0_10] : memref<1x32xf32, #tpu.memory_space<vmem>>, vector<1x32xf32>
    %14 = vector.broadcast %13 : vector<1x32xf32> to vector<16x32xf32>
    %15 = arith.addf %12, %14 : vector<16x32xf32>
    %16 = arith.mulf %10, %15 : vector<16x32xf32>
    %c0_11 = arith.constant 0 : index
    %c0_12 = arith.constant 0 : index
    %17 = vector.load %arg6[%c0_11, %c0_12] : memref<16x32xf32, #tpu.memory_space<vmem>>, vector<16x32xf32>
    tpu.vector_store %arg6[%c0_11, %c0_12], %16 {strides = array<i32>} : memref<16x32xf32, #tpu.memory_space<vmem>>, vector<16x32xf32>,
    return
  }
  func.func @transform_0(%arg0: i32) -> (i32, i32) {
    %c0_i32 = arith.constant 0 : i32
    %c0_i32_0 = arith.constant 0 : i32
    return %arg0, %c0_i32 : i32, i32
  }
  func.func @transform_1(%arg0: i32) -> (i32, i32) {
    %c0_i32 = arith.constant 0 : i32
    %c0_i32_0 = arith.constant 0 : i32
    %c0_i32_1 = arith.constant 0 : i32
    return %c0_i32, %c0_i32_0 : i32, i32
  }
  func.func @transform_2(%arg0: i32) -> (i32, i32) {
    %c0_i32 = arith.constant 0 : i32
    %c0_i32_0 = arith.constant 0 : i32
    %c0_i32_1 = arith.constant 0 : i32
    return %c0_i32, %c0_i32_0 : i32, i32
  }
  func.func @transform_3(%arg0: i32) -> (i32, i32) {
    %c0_i32 = arith.constant 0 : i32
    %c0_i32_0 = arith.constant 0 : i32
    %c0_i32_1 = arith.constant 0 : i32
    return %c0_i32, %c0_i32_0 : i32, i32
  }
  func.func @transform_4(%arg0: i32) -> (i32, i32) {
    %c0_i32 = arith.constant 0 : i32
    %c0_i32_0 = arith.constant 0 : i32
    %c0_i32_1 = arith.constant 0 : i32
    return %c0_i32, %c0_i32_0 : i32, i32
  }
  func.func @transform_5(%arg0: i32) -> (i32, i32) {
    %c0_i32 = arith.constant 0 : i32
    %c0_i32_0 = arith.constant 0 : i32
    return %arg0, %c0_i32 : i32, i32
  }
}

</mosaic_0001>

<bundles_post_ra>
// kernel: tpu_custom_call.1
= control target key start
LH: loop header
LB: loop body
LE: loop exit
PB: predicated region body
PF: predicated region fallthrough
CT: control target
= control target key end

     0   :  { %10 = vsyncpa [#allocation3], 0  ;;  %s558_s0 = inlined_call_operand.hbm [shape: f32[16,32], index: 0, kind: input, shape index: {}]   ;;  %s559_s1 = inlined_call_operand.hbm [shape: f32[32,32], index: 1, kind: input, shape index: {}]   ;;  %s560_s2 = inlined_call_operand.vmem [shape: f32[1,32], index: 2, kind: input, shape index: {}]   ;;  %s561_s3 = inlined_call_operand.hbm [shape: f32[32,32], index: 3, kind: input, shape index: {}]   ;;  %s562_s4 = inlined_call_operand.vmem [shape: f32[1,32], index: 4, kind: input, shape index: {}]   ;;  %s563_s5 = inlined_call_operand.hbm [shape: f32[16,32], index: 5, kind: output, shape index: {}]  }
   0x1   :  { %11 = vsyncpa [#allocation6], 0 }
   0x2   :  { %12 = vsyncpa [#allocation4], 0  ;;  %s443_s18 = smov [#allocation5]   ;;  %s444_s20 = smov [#allocation2]  }
   0x3   :  { %s30_s19 = sshll.u32 %s443_s18, 4  ;;  %s18_s21 = sshll.u32 %s444_s20, 4  ;;  %s31_s19 = int_to_ptr.vmem [resolvable:$true] %s30_s19  ;;  %s479_s21 = int_to_ptr.vmem [resolvable:$true] %s18_s21 }
   0x4   :  { %s349_s24 = scalar_lea.hbm %s559_s1, 512 }
   0x5   :  { %p350_p0 = scmp.ne.s32.totalorder %s559_s1, %s349_s24  ;;  %p353_p1 = scmp.lt.u32.totalorder %s349_s24, %s559_s1 }
   0x7   :  { %p355_p2 = pnand %p353_p1, %p350_p0 }
   0x9   :  { %358 = shalt.err (!%p355_p2)
}
   0xa   :  { %s359_s29 = scalar_lea.vmem %s31_s19, 512  ;;  %p364_p4 = scmp.lt.s32.totalorder %s31_s19, %s31_s19 }
   0xb   :  { %p360_p3 = scmp.ne.s32.totalorder %s31_s19, %s359_s29  ;;  %p365_p5 = scmp.lt.s32.totalorder %s359_s29, %s359_s29 }
   0xd   :  { %p366_p6 = por %p365_p5, %p364_p4 }
   0xf   :  { %p367_p7 = pnand %p366_p6, %p360_p3 }
  0x11   :  { %370 = shalt.err (!%p367_p7)
}
  0x12   :  { %s445_s30 = smov 128   ;;  %s446_s6 = smov 8  }
  0x13   :  { %36 = dma.hbm_to_vmem [thread:$0]  %s559_s1, 512, %s31_s19, [#allocation6], %s445_s30, %s445_s30, %s446_s6  }
  0x14   :  { %s371_s11 = scalar_lea.hbm %s558_s0, 256 }
  0x15   :  { %p372_p8 = scmp.ne.s32.totalorder %s558_s0, %s371_s11  ;;  %p375_p9 = scmp.lt.u32.totalorder %s371_s11, %s558_s0 }
  0x17   :  { %p377_p10 = pnand %p375_p9, %p372_p8 }
  0x19   :  { %380 = shalt.err (!%p377_p10)
}
  0x1a   :  { %s381_s16 = scalar_lea.vmem %s479_s21, 256  ;;  %p386_p12 = scmp.lt.s32.totalorder %s479_s21, %s479_s21 }
  0x1b   :  { %p382_p11 = scmp.ne.s32.totalorder %s479_s21, %s381_s16  ;;  %p387_p13 = scmp.lt.s32.totalorder %s381_s16, %s381_s16 }
  0x1d   :  { %p388_p0 = por %p387_p13, %p386_p12 }
  0x1f   :  { %p389_p1 = pnand %p388_p0, %p382_p11 }
  0x21   :  { %392 = shalt.err (!%p389_p1)
}
  0x22   :  { %24 = dma.hbm_to_vmem [thread:$0]  %s558_s0, 256, %s479_s21, [#allocation3], %s445_s30, %s445_s30, %s446_s6  }
  0x23   :  { %s447_s18 = smov [#allocation7]   ;;  %s393_s23 = scalar_lea.hbm %s561_s3, 512 }
  0x24   :  { %s44_s19 = sshll.u32 %s447_s18, 4  ;;  %p394_p2 = scmp.ne.s32.totalorder %s561_s3, %s393_s23  ;;  %s45_s19 = int_to_ptr.vmem [resolvable:$true] %s44_s19 }
  0x25   :  { %p397_p3 = scmp.lt.u32.totalorder %s393_s23, %s561_s3 }
  0x27   :  { %p399_p4 = pnand %p397_p3, %p394_p2 }
  0x29   :  { %402 = shalt.err (!%p399_p4)
}
  0x2a   :  { %s403_s28 = scalar_lea.vmem %s45_s19, 512  ;;  %p408_p6 = scmp.lt.s32.totalorder %s45_s19, %s45_s19 }
  0x2b   :  { %p404_p5 = scmp.ne.s32.totalorder %s45_s19, %s403_s28  ;;  %p409_p7 = scmp.lt.s32.totalorder %s403_s28, %s403_s28 }
  0x2d   :  { %p410_p8 = por %p409_p7, %p408_p6 }
  0x2f   :  { %p411_p9 = pnand %p410_p8, %p404_p5 }
  0x31   :  { %414 = shalt.err (!%p411_p9)
}
  0x32   :  { %50 = dma.hbm_to_vmem [thread:$0]  %s561_s3, 512, %s45_s19, [#allocation6], %s445_s30, %s445_s30, %s446_s6  }
  0x33   :  { %437 = dma.done.wait [#allocation3], 256  }
  0x34   :  { %438 = vsyncadd [#allocation3], 4294967040 }
  0x35   :  { %439 = dma.done.wait [#allocation6], 1024  }
  0x36   :  { %440 = vsyncadd [#allocation6], 4294966272  ;;  %vm75_vm0 = vcmask 261120   ;;  %v64_v0 = vld [vmem:[#allocation5] sm:$0xff]  ;;  %v65_v1 = vld [vmem:[#allocation5 + $0x8] sm:$0xff] }
  0x37   :  { %v66_v2 = vld [vmem:[#allocation5 + $0x10] sm:$0xff]  ;;  %v319_v3 = vpack.c.bf16 %v65_v1, %v64_v0  ;;  %v67_v4 = vld [vmem:[#allocation5 + $0x18] sm:$0xff]  ;;  %v169_v7 = vld [vmem:[#allocation7] sm:$0xff] }
  0x38   :  { %v62_v5 = vld [vmem:[#allocation2] sm:$0xff]  ;;  %v323_v6 = vpack.c.bf16 %v67_v4, %v66_v2  ;;  %v170_v8 = vld [vmem:[#allocation7 + $0x8] sm:$0xff]  ;;  %v172_v11 = vld [vmem:[#allocation7 + $0x18] sm:$0xff] }
  0x39   :  { %305 = vmatprep.mubr.msk.f32.mxu0 %vm75_vm0, %v62_v5  ;;  %v171_v9 = vld [vmem:[#allocation7 + $0x10] sm:$0xff]  ;;  %316 = vmatprep.mubr.msk.f32.mxu1 %vm75_vm0, %v62_v5  ;;  %v327_v10 = vpack.c.bf16 %v170_v8, %v169_v7  ;;  %v63_v13 = vld [vmem:[#allocation2 + $0x8] sm:$0xff] }
  0x3a   :  { %320 = vmatprep.subr.bf16.mxu0 %v319_v3  ;;  %v331_v12 = vpack.c.bf16 %v172_v11, %v171_v9  ;;  %v277_v14 = vld [vmem:[%s560_s2] ss:$0 sm:$0xff]  ;;  %s448_s2 = smov [#allocation8]  }
  0x3b   :  { %322 = vmatpush3.bf16.msra.mxu0 %v319_v3  ;;  %328 = vmatprep.subr.bf16.mxu1 %v327_v10  ;;  %v282_v27 = vld [vmem:[%s562_s4] ss:$0 sm:$0xff]  ;;  %s264_s9 = sshll.u32 %s448_s2, 4  ;;  %s265_s9 = int_to_ptr.vmem [resolvable:$true] %s264_s9 }
  0x3c   :  { %324 = vmatprep.subr.bf16.mxu0 %v323_v6  ;;  %330 = vmatpush3.bf16.msra.mxu1 %v327_v10  ;;  %s415_s10 = scalar_lea.vmem %s265_s9, 256  ;;  %p420_p11 = scmp.lt.s32.totalorder %s265_s9, %s265_s9 }
  0x3d   :  { %332 = vmatprep.subr.bf16.mxu1 %v331_v12  ;;  %p416_p10 = scmp.ne.s32.totalorder %s265_s9, %s415_s10  ;;  %p421_p12 = scmp.lt.s32.totalorder %s415_s10, %s415_s10 }
  0x3f   :  { %326 = vmatpush3.bf16.msra.mxu0 %v323_v6  ;;  %p422_p13 = por %p421_p12, %p420_p11 }
  0x40   :  { %334 = vmatpush3.bf16.msra.mxu1 %v331_v12 }
  0x41   :  { %p423_p0 = pnand %p422_p13, %p416_p10 }
  0x42   :  { %306 = vmatmul.mubr.msk.f32.vlgmr.msra.gmra.mrb[0].mxu0 %vm75_vm0, %v63_v13 }
  0x43   :  { %317 = vmatmul.mubr.msk.f32.vlgmr.msra.gmra.mrb[0].mxu1 %vm75_vm0, %v63_v13 }
 0x115   :  { %v307_v15 = vpop.f32.mrb[0].mxu0 }
 0x116   :  { %v154_v16 = vadd.f32 %v307_v15, %v277_v14  ;;  %v148_v17 = vpop.f32.mrb[1].mxu0  ;;  %v318_v19 = vpop.f32.mrb[0].mxu1 }
 0x117   :  { %v149_v18 = vadd.f32 %v277_v14, %v148_v17  ;;  %v246_v21 = vpop.f32.mrb[1].mxu1  ;;  %v252_v28 = vadd.f32 %v318_v19, %v282_v27 }
 0x118   :  { %v281_v20 = vmul.f32 -1.442695, %v154_v16  ;;  %v247_v29 = vadd.f32 %v282_v27, %v246_v21 }
 0x119   :  { %v280_v22 = vmul.f32 -1.442695, %v149_v18 }
 0x11a   :  { %341 = vpow2.f32 %v281_v20 }
 0x11b   :  { %343 = vpow2.f32 %v280_v22 }
 0x124   :  { %v342_v23 = vpop.eup %341 }
 0x125   :  { %v344_v24 = vpop.eup %343  ;;  %v164_v25 = vadd.f32 1.0, %v342_v23 }
 0x126   :  { %v163_v26 = vadd.f32 1.0, %v344_v24 }
 0x127   :  { %345 = vrcp.f32 %v164_v25 }
 0x128   :  { %347 = vrcp.f32 %v163_v26 }
 0x131   :  { %v346_v30 = vpop.eup %345 }
 0x132   :  { %v348_v31 = vpop.eup %347  ;;  %v256_v32 = vmul.f32 %v346_v30, %v252_v28 }
 0x133   :  { %v255_v33 = vmul.f32 %v348_v31, %v247_v29 }
 0x134   :  { %258 = vst.msk [vmem:[#allocation8 + $0x8] sm:$0xff] %vm75_vm0, %v256_v32 }
 0x135   :  { %257 = vst.msk [vmem:[#allocation8] sm:$0xff] %vm75_vm0, %v255_v33 }
 0x136   :  { %426 = shalt.err (!%p423_p0)
}
 0x137   :  { %s427_s12 = scalar_lea.hbm %s563_s5, 256 }
 0x138   :  { %p428_p1 = scmp.ne.s32.totalorder %s563_s5, %s427_s12  ;;  %p431_p2 = scmp.lt.u32.totalorder %s427_s12, %s563_s5 }
 0x13a   :  { %p433_p3 = pnand %p431_p2, %p428_p1 }
 0x13c   :  { %436 = shalt.err (!%p433_p3)
}
 0x13d   :  { %270 = dma.vmem_to_hbm [thread:$0]  %s265_s9, 256, %s563_s5, [#allocation4], %s445_s30, %s445_s30, %s446_s6  }
 0x13e   :  { %441 = dma.done.wait [#allocation4], 256  }
 0x13f   :  { %442 = vsyncadd [#allocation4], 4294967040 }
 0x140   :  { %274 = vsyncpa [#allocation3], 1 }
 0x141   :  { %275 = vsyncpa [#allocation6], 1 }
 0x142   :  { %276 = vsyncpa [#allocation4], 1 }

</bundles_post_ra>
